<compile_context>
chip_gen: v5e
topology: v5e:2x2
jax: 0.10.0
libtpu: 0.0.40
codegen_flags: <defaults>
</compile_context>

<pallas_src>
import functools
import numpy as np

import jax
import jax.numpy as jnp
from jax.experimental import pallas as pl
from jax.experimental.pallas import tpu as pltpu

NUM_CLASSES = 21
_VMEM_LIMIT = 48 * 1024 * 1024   # explicit scoped-VMEM budget with headroom (v7x phys = 64 MiB)


def _round_up(x, m):
    return (x + m - 1) // m * m


def _pick_tile(dim, cap, align):
    """Adaptive tile: full (aligned) extent for small dims, `cap` for large ones."""
    return cap if dim >= cap else _round_up(dim, align)


def _lane_tile_cap():
    """Output-lane tile cap: 256 matches the 2x256^2 MXU of v6e/v7x; v5e MXU is 4x128^2."""
    try:
        kind = jax.devices()[0].device_kind.lower()
        if "v5 lite" in kind or "v5e" in kind:
            return 128
    except Exception:
        pass
    return 256


_BN_CAP = _lane_tile_cap()


# --------------------------------------------------------------------------- #
# Pallas kernels
# --------------------------------------------------------------------------- #
def _matmul_bn_kernel(*refs, apply_relu, has_residual):
    """Tiled bf16 matmul, f32 accumulate, per-column scale/bias (folded BN)
    (+ optional fused bf16 residual add) (+ optional ReLU) epilogue."""
    if has_residual:
        a_ref, b_ref, scale_ref, bias_ref, res_ref, o_ref, acc_ref = refs
    else:
        a_ref, b_ref, scale_ref, bias_ref, o_ref, acc_ref = refs
        res_ref = None

    @pl.when(pl.program_id(2) == 0)
    def _():
        acc_ref[...] = jnp.zeros_like(acc_ref)

    acc_ref[...] += jnp.dot(a_ref[...], b_ref[...], preferred_element_type=jnp.float32)

    @pl.when(pl.program_id(2) == pl.num_programs(2) - 1)
    def _():
        y = acc_ref[...] * scale_ref[...] + bias_ref[...]
        if has_residual:
            y = y + res_ref[...].astype(jnp.float32)
        if apply_relu:
            y = jnp.maximum(y, 0.0)
        o_ref[...] = y.astype(o_ref.dtype)


def matmul_scale_bias(a, b, scale, bias, relu, residual=None, out_dtype=jnp.bfloat16):
    """(M,K) @ (K,N) -> per-column y*scale+bias (+residual) (+ReLU) via Pallas MXU kernel.

    Operands are cast to bf16 (f32 accumulation / epilogue); tiles are adaptive so
    small K/N (stem K=147, layer1 K=64, final N=21) are not padded up to 512."""
    M, K = a.shape
    _, N = b.shape
    a = a.astype(jnp.bfloat16)
    b = b.astype(jnp.bfloat16)

    bm = _pick_tile(M, 512, 8)
    bn = _pick_tile(N, _BN_CAP, 128)
    bk = _pick_tile(K, 512, 128)
    Mp, Kp, Np = _round_up(M, bm), _round_up(K, bk), _round_up(N, bn)

    if (Mp, Kp) != (M, K):
        a = jnp.pad(a, ((0, Mp - M), (0, Kp - K)))
    if (Kp, Np) != (K, N):
        b = jnp.pad(b, ((0, Kp - K), (0, Np - N)))
    s = scale.reshape(1, N).astype(jnp.float32)
    t = bias.reshape(1, N).astype(jnp.float32)
    if Np != N:
        s = jnp.pad(s, ((0, 0), (0, Np - N)))
        t = jnp.pad(t, ((0, 0), (0, Np - N)))

    args = [a, b, s, t]
    in_specs = [
        pl.BlockSpec((bm, bk), lambda i, j, k: (i, k)),
        pl.BlockSpec((bk, bn), lambda i, j, k: (k, j)),
        pl.BlockSpec((1, bn), lambda i, j, k: (0, j)),
        pl.BlockSpec((1, bn), lambda i, j, k: (0, j)),
    ]
    has_res = residual is not None
    if has_res:
        r = residual.astype(jnp.bfloat16)          # residual streamed in bf16, upcast in-kernel
        if (Mp, Np) != (M, N):
            r = jnp.pad(r, ((0, Mp - M), (0, Np - N)))
        args.append(r)
        in_specs.append(pl.BlockSpec((bm, bn), lambda i, j, k: (i, j)))

    kernel = functools.partial(_matmul_bn_kernel, apply_relu=relu, has_residual=has_res)
    out = pl.pallas_call(
        kernel,
        out_shape=jax.ShapeDtypeStruct((Mp, Np), out_dtype),
        grid_spec=pltpu.PrefetchScalarGridSpec(
            num_scalar_prefetch=0,
            grid=(Mp // bm, Np // bn, Kp // bk),
            in_specs=in_specs,
            out_specs=pl.BlockSpec((bm, bn), lambda i, j, k: (i, j)),
            scratch_shapes=[pltpu.VMEM((bm, bn), jnp.float32)],
        ),
        compiler_params=pltpu.CompilerParams(
            dimension_semantics=("parallel", "parallel", "arbitrary"),
            vmem_limit_bytes=_VMEM_LIMIT),
    )(*args)
    if (Mp, Np) != (M, N):
        out = out[:M, :N]
    return out


def _max3_kernel(a_ref, b_ref, c_ref, o_ref):
    o_ref[...] = jnp.maximum(jnp.maximum(a_ref[...], b_ref[...]), c_ref[...])


def _max3(a, b, c):
    """Tiled elementwise max of three (R, C) slabs (grid over row blocks).

    When C is not lane-aligned (e.g. C=64 after the stem) the slabs are reshaped
    to a lane-dense (R*C/newC, newC) layout so the output store is an unmasked
    full-lane vst (elementwise op => any reshape is valid)."""
    R, C = a.shape
    total = R * C
    newC = C
    if C % 128 != 0:
        for cand in (2048, 1024, 512, 256, 128):
            if total % cand == 0:
                newC = cand
                break
    newR = total // newC
    if newC != C:
        a, b, c = (v.reshape(newR, newC) for v in (a, b, c))

    br = _pick_tile(newR, 1024, 8)
    Rp = _round_up(newR, br)
    if Rp != newR:
        a, b, c = (jnp.pad(v, ((0, Rp - newR), (0, 0))) for v in (a, b, c))
    out = pl.pallas_call(
        _max3_kernel,
        out_shape=jax.ShapeDtypeStruct((Rp, newC), a.dtype),
        grid=(Rp // br,),
        in_specs=[pl.BlockSpec((br, newC), lambda i: (i, 0))] * 3,
        out_specs=pl.BlockSpec((br, newC), lambda i: (i, 0)),
        compiler_params=pltpu.CompilerParams(
            dimension_semantics=("parallel",),
            vmem_limit_bytes=_VMEM_LIMIT),
    )(a, b, c)
    if Rp != newR:
        out = out[:newR]
    return out.reshape(R, C) if newC != C else out


def _gap_kernel(x_ref, o_ref, acc_ref, *, inv_denom):
    @pl.when(pl.program_id(1) == 0)
    def _():
        acc_ref[...] = jnp.zeros_like(acc_ref)
    acc_ref[...] += jnp.sum(x_ref[...], axis=1, keepdims=True)
    @pl.when(pl.program_id(1) == pl.num_programs(1) - 1)
    def _():
        o_ref[...] = (acc_ref[...] * inv_denom).astype(o_ref.dtype)


# --------------------------------------------------------------------------- #
# Conv / pool wrappers (im2col glue in JAX, compute in Pallas)
# --------------------------------------------------------------------------- #
def _tap_has_data(offset, stride, count, pad, size):
    """True iff the strided tap window touches real (non-padding) data.  Static math."""
    t0 = max(0, (pad - offset + stride - 1) // stride)
    return t0 < count and offset + t0 * stride < pad + size


@functools.partial(jax.jit,
                   static_argnames=("stride", "dilation", "padding", "relu", "out_dtype"))
def conv_bn(x, p, residual=None, *, stride=1, dilation=1, padding=0, relu=True,
            out_dtype=jnp.bfloat16):
    """NHWC conv (bias-free) + folded BatchNorm (+ fused residual) (+ ReLU).
    p = (w[kh,kw,cin,cout], scale, bias)."""
    w, scale, bias = p
    kh, kw, cin, cout = w.shape
    N, H, W, _ = x.shape
    Ho = (H + 2 * padding - dilation * (kh - 1) - 1) // stride + 1
    Wo = (W + 2 * padding - dilation * (kw - 1) - 1) // stride + 1

    xb = x.astype(jnp.bfloat16)
    wb = w.astype(jnp.bfloat16)

    if kh == 1 and kw == 1 and padding == 0:
        patches = xb[:, ::stride, ::stride, :].reshape(N * Ho * Wo, cin)
        wmat = wb.reshape(cin, cout)
    else:
        # TODO(synk): move this im2col into the matmul kernel (tap grid axis + shifted DMA).
        xp = jnp.pad(xb, ((0, 0), (padding, padding), (padding, padding), (0, 0)))
        cols, wcols = [], []
        for i in range(kh):
            hs = i * dilation
            if not _tap_has_data(hs, stride, Ho, padding, H):
                continue                      # tap reads only zero padding -> contributes 0
            for j in range(kw):
                ws = j * dilation
                if not _tap_has_data(ws, stride, Wo, padding, W):
                    continue
                cols.append(xp[:, hs:hs + (Ho - 1) * stride + 1:stride,
                               ws:ws + (Wo - 1) * stride + 1:stride, :])
                wcols.append(wb[i, j])
        patches = jnp.concatenate(cols, axis=-1).reshape(N * Ho * Wo, len(cols) * cin)
        wmat = jnp.concatenate(wcols, axis=0)

    res = None if residual is None else residual.reshape(N * Ho * Wo, cout)
    out = matmul_scale_bias(patches, wmat, scale, bias, relu, residual=res,
                            out_dtype=out_dtype)
    return out.reshape(N, Ho, Wo, cout)


@jax.jit
def maxpool3x3_s2(x):
    """MaxPool2d(kernel=3, stride=2, padding=1), separable (row max then col max)."""
    N, H, W, C = x.shape
    Ho = (H + 2 - 3) // 2 + 1
    Wo = (W + 2 - 3) // 2 + 1
    xp = jnp.pad(x, ((0, 0), (1, 1), (1, 1), (0, 0)), constant_values=-jnp.inf)
    Hp = H + 2
    # horizontal max of 3 taps, stride 2
    cols = [xp[:, :, j:j + (Wo - 1) * 2 + 1:2, :].reshape(N * Hp * Wo, C) for j in range(3)]
    r = _max3(*cols).reshape(N, Hp, Wo, C)
    # vertical max of 3 taps, stride 2
    rows = [r[:, i:i + (Ho - 1) * 2 + 1:2, :, :].reshape(N * Ho * Wo, C) for i in range(3)]
    out = _max3(*rows).reshape(N, Ho, Wo, C)
    return out


@jax.jit
def global_avg_pool(x):
    """AdaptiveAvgPool2d(1) as a tiled accumulating Pallas reduction."""
    N, H, W, C = x.shape
    S = H * W
    xs = x.reshape(N, S, C).astype(jnp.float32)
    bs = _pick_tile(S, 512, 8)
    Sp = _round_up(S, bs)
    if Sp != S:
        xs = jnp.pad(xs, ((0, 0), (0, Sp - S), (0, 0)))
    out = pl.pallas_call(
        functools.partial(_gap_kernel, inv_denom=1.0 / S),
        out_shape=jax.ShapeDtypeStruct((N, 1, C), jnp.float32),
        grid_spec=pltpu.PrefetchScalarGridSpec(
            num_scalar_prefetch=0,
            grid=(N, Sp // bs),
            in_specs=[pl.BlockSpec((1, bs, C), lambda n, s: (n, s, 0))],
            out_specs=pl.BlockSpec((1, 1, C), lambda n, s: (n, 0, 0)),
            scratch_shapes=[pltpu.VMEM((1, 1, C), jnp.float32)],
        ),
        compiler_params=pltpu.CompilerParams(
            dimension_semantics=("parallel", "arbitrary"),
            vmem_limit_bytes=_VMEM_LIMIT),
    )(xs)
    return out.reshape(N, 1, 1, C)


def _bilinear_matrix(out_size, in_size):
    """Interpolation matrix matching F.interpolate(mode='bilinear', align_corners=False)."""
    i = np.arange(out_size, dtype=np.float64)
    scale = in_size / out_size
    src = np.maximum((i + 0.5) * scale - 0.5, 0.0)
    i0 = np.minimum(np.floor(src).astype(np.int64), in_size - 1)
    i1 = np.minimum(i0 + 1, in_size - 1)
    l1 = src - i0
    w = np.zeros((out_size, in_size), dtype=np.float32)
    w[np.arange(out_size), i0] += (1.0 - l1)
    w[np.arange(out_size), i1] += l1
    return w


@functools.partial(jax.jit, static_argnames=("H", "W"))
def bilinear_upsample(x, H, W):
    """Bilinear resize (align_corners=False) as two separable Pallas matmuls."""
    N, h, w, C = x.shape
    Rh = jnp.asarray(_bilinear_matrix(H, h))   # (H, h)
    Rw = jnp.asarray(_bilinear_matrix(W, w))   # (W, w)
    # rows: (H,h) @ (h, N*w*C)
    t = x.transpose(1, 0, 2, 3).reshape(h, N * w * C)
    t = matmul_scale_bias(Rh, t, jnp.ones((N * w * C,), jnp.float32),
                          jnp.zeros((N * w * C,), jnp.float32), relu=False,
                          out_dtype=jnp.float32)
    # cols: (W,w) @ (w, N*H*C)
    t = t.reshape(H, N, w, C).transpose(2, 1, 0, 3).reshape(w, N * H * C)
    t = matmul_scale_bias(Rw, t, jnp.ones((N * H * C,), jnp.float32),
                          jnp.zeros((N * H * C,), jnp.float32), relu=False,
                          out_dtype=jnp.float32)
    return t.reshape(W, N, H, C).transpose(1, 2, 0, 3)   # (N,H,W,C)


# --------------------------------------------------------------------------- #
# Deterministic parameter initialization (shapes of deeplabv3_resnet101)
# --------------------------------------------------------------------------- #
class _KeyGen:
    def __init__(self, key):
        self._key = key

    def __call__(self):
        self._key, k = jax.random.split(self._key)
        return k


def _conv_init(key, kh, kw, cin, cout, gain=0.2):
    fan_in = kh * kw * cin
    return gain * jnp.sqrt(2.0 / fan_in) * jax.random.normal(key, (kh, kw, cin, cout), jnp.float32)


def _bn_init(key, c):
    k1, k2 = jax.random.split(key)
    scale = 1.0 + 0.05 * jax.random.normal(k1, (c,), jnp.float32)   # gamma / sqrt(var+eps) folded
    bias = 0.05 * jax.random.normal(k2, (c,), jnp.float32)          # beta - mean*scale folded
    return scale, bias


def _conv_bn_init(key, kh, kw, cin, cout):
    k1, k2 = jax.random.split(key)
    w = _conv_init(k1, kh, kw, cin, cout)
    s, b = _bn_init(k2, cout)
    return (w, s, b)


def init_deeplabv3_resnet101_params(key):
    kg = _KeyGen(key)
    params = {"stem": _conv_bn_init(kg(), 7, 7, 3, 64)}

    inplanes = 64
    dilation = 1

    def make_layer(planes, blocks, stride, dilate):
        nonlocal inplanes, dilation
        prev_dilation = dilation
        if dilate:                     # replace_stride_with_dilation=[False, True, True]
            dilation *= stride
            stride = 1
        layer = []
        for b in range(blocks):
            if b == 0:
                blk_stride, blk_dilation = stride, prev_dilation
                need_ds = (stride != 1) or (inplanes != planes * 4)
            else:
                blk_stride, blk_dilation = 1, dilation
                need_ds = False
            blk = {
                "conv1": _conv_bn_init(kg(), 1, 1, inplanes, planes),
                "conv2": _conv_bn_init(kg(), 3, 3, planes, planes),
                "conv3": _conv_bn_init(kg(), 1, 1, planes, planes * 4),
                "downsample": _conv_bn_init(kg(), 1, 1, inplanes, planes * 4) if need_ds else None,
                "stride": blk_stride,
                "dilation": blk_dilation,
            }
            layer.append(blk)
            inplanes = planes * 4
        return layer

    params["layer1"] = make_layer(64, 3, stride=1, dilate=False)
    params["layer2"] = make_layer(128, 4, stride=2, dilate=False)
    params["layer3"] = make_layer(256, 23, stride=2, dilate=True)
    params["layer4"] = make_layer(512, 3, stride=2, dilate=True)

    # DeepLabHead: ASPP(2048, [12, 24, 36]) -> 3x3 conv 256 -> 1x1 conv NUM_CLASSES (with bias)
    params["head"] = {
        "aspp0": _conv_bn_init(kg(), 1, 1, 2048, 256),
        "aspp1": _conv_bn_init(kg(), 3, 3, 2048, 256),
        "aspp2": _conv_bn_init(kg(), 3, 3, 2048, 256),
        "aspp3": _conv_bn_init(kg(), 3, 3, 2048, 256),
        "aspp_pool": _conv_bn_init(kg(), 1, 1, 2048, 256),
        "project": _conv_bn_init(kg(), 1, 1, 5 * 256, 256),
        "head_conv": _conv_bn_init(kg(), 3, 3, 256, 256),
        "final_w": _conv_init(kg(), 1, 1, 256, NUM_CLASSES, gain=1.0),
        "final_b": 0.01 * jax.random.normal(kg(), (NUM_CLASSES,), jnp.float32),
    }
    return params


# --------------------------------------------------------------------------- #
# Forward pass
# --------------------------------------------------------------------------- #
def bottleneck_forward(x, blk):
    out = conv_bn(x, blk["conv1"], relu=True)
    out = conv_bn(out, blk["conv2"], stride=blk["stride"], dilation=blk["dilation"],
                  padding=blk["dilation"], relu=True)
    if blk["downsample"] is not None:
        identity = conv_bn(x, blk["downsample"], stride=blk["stride"], relu=False)
    else:
        identity = x
    # residual add + ReLU fused into conv3's matmul epilogue
    out = conv_bn(out, blk["conv3"], residual=identity, relu=True)
    return out


def deeplab_head_forward(x, head):
    N, h, w, _ = x.shape
    branches = [conv_bn(x, head["aspp0"], relu=True)]
    for name, rate in (("aspp1", 12), ("aspp2", 24), ("aspp3", 36)):
        branches.append(conv_bn(x, head[name], dilation=rate, padding=rate, relu=True))
    pooled = global_avg_pool(x)                                   # (N,1,1,2048)
    pooled = conv_bn(pooled, head["aspp_pool"], relu=True)        # (N,1,1,256)
    branches.append(jnp.broadcast_to(pooled, (N, h, w, 256)))     # bilinear from 1x1 == broadcast
    cat = jnp.concatenate(branches, axis=-1)                      # (N,h,w,1280)
    y = conv_bn(cat, head["project"], relu=True)                  # Dropout(0.5) is identity (eval)
    y = conv_bn(y, head["head_conv"], padding=1, relu=True)
    ones = jnp.ones((NUM_CLASSES,), jnp.float32)
    y = conv_bn(y, (head["final_w"], ones, head["final_b"]), relu=False,
                out_dtype=jnp.float32)                            # logits kept in f32
    return y


def deeplabv3_resnet101_forward(x_nchw, params):
    x = jnp.transpose(x_nchw, (0, 2, 3, 1)).astype(jnp.float32)   # NCHW -> NHWC
    N, H, W, _ = x.shape
    x = conv_bn(x, params["stem"], stride=2, padding=3, relu=True)
    x = maxpool3x3_s2(x)
    for name in ("layer1", "layer2", "layer3", "layer4"):
        for blk in params[name]:
            x = bottleneck_forward(x, blk)
    x = deeplab_head_forward(x, params["head"])                   # res['out'] at low resolution
    x = bilinear_upsample(x, H=H, W=W)                            # upsample to input size
    return jnp.transpose(x, (0, 3, 1, 2))                         # NHWC -> NCHW (PyTorch order)


# --------------------------------------------------------------------------- #
if __name__ == "__main__":
    key = jax.random.PRNGKey(0)
    k_in, k_par = jax.random.split(key)
    # Small input consistent with the module: NCHW, 3 input channels.
    x = jax.random.normal(k_in, (2, 3, 32, 32), jnp.float32)
    params = init_deeplabv3_resnet101_params(k_par)
    out = deeplabv3_resnet101_forward(x, params)
    out = jax.block_until_ready(out)
    assert out.shape == (2, NUM_CLASSES, 32, 32), out.shape
    assert bool(jnp.all(jnp.isfinite(out)))
    print("KERNEL_OK")
</pallas_src>

<mosaic_0001>
module attributes {stable_mosaic.version = 11 : i64} {
  func.func @_matmul_bn_kernel(%arg0: i32, %arg1: i32, %arg2: i32, %arg3: memref<512x256xbf16, #tpu.memory_space<vmem>>, %arg4: memref<256x128xbf16, #tpu.memory_space<vmem>>, %arg5: memref<1x128xf32, #tpu.memory_space<vmem>>, %arg6: memref<1x128xf32, #tpu.memory_space<vmem>>, %arg7: memref<512x128xbf16, #tpu.memory_space<vmem>>, %arg8: memref<512x128xf32, #tpu.memory_space<vmem>>) attributes {dimension_semantics = [#tpu.dimension_semantics<parallel>, #tpu.dimension_semantics<parallel>, #tpu.dimension_semantics<arbitrary>], iteration_bounds = array<i64: 1, 1, 1>, scalar_prefetch = 0 : i64, scratch_operands = 1 : i64, tpu.core_type = #tpu.core_type<tc>, window_params = [{transform_indices = @transform_0, window_bounds = array<i64: 512, 256>}, {transform_indices = @transform_1, window_bounds = array<i64: 256, 128>}, {transform_indices = @transform_2, window_bounds = array<i64: 1, 128>}, {transform_indices = @transform_3, window_bounds = array<i64: 1, 128>}, {transform_indices = @transform_4, window_bounds = array<i64: 512, 128>}]} {
    %c0_i32 = arith.constant 0 : i32
    %0 = arith.cmpi eq, %arg2, %c0_i32 : i32
    %1 = arith.extui %0 : i1 to i32
    %c0_i32_0 = arith.constant 0 : i32
    %2 = arith.cmpi ne, %1, %c0_i32_0 : i32
    scf.if %2 {
      %cst_10 = arith.constant 0.000000e+00 : f32
      %12 = vector.broadcast %cst_10 : f32 to vector<512x128xf32>
      %c0_11 = arith.constant 0 : index
      %c0_12 = arith.constant 0 : index
      %13 = vector.load %arg8[%c0_11, %c0_12] : memref<512x128xf32, #tpu.memory_space<vmem>>, vector<512x128xf32>
      tpu.vector_store %arg8[%c0_11, %c0_12], %12 {strides = array<i32>} : memref<512x128xf32, #tpu.memory_space<vmem>>, vector<512x128xf32>,
    } else {
    }
    %c0 = arith.constant 0 : index
    %c0_1 = arith.constant 0 : index
    %3 = vector.load %arg8[%c0, %c0_1] : memref<512x128xf32, #tpu.memory_space<vmem>>, vector<512x128xf32>
    %c0_2 = arith.constant 0 : index
    %c0_3 = arith.constant 0 : index
    %4 = vector.load %arg3[%c0_2, %c0_3] : memref<512x256xbf16, #tpu.memory_space<vmem>>, vector<512x256xbf16>
    %c0_4 = arith.constant 0 : index
    %c0_5 = arith.constant 0 : index
    %5 = vector.load %arg4[%c0_4, %c0_5] : memref<256x128xbf16, #tpu.memory_space<vmem>>, vector<256x128xbf16>
    %cst = arith.constant dense<0.000000e+00> : vector<512x128xf32>
    %6 = tpu.matmul %4, %5, %cst {dimension_numbers = #tpu.dot_dimension_numbers<[1], [0], [0], [1], [0, 0, 1, 1], [], []>} : vector<512x256xbf16>, vector<256x128xbf16>, vector<512x128xf32> -> vector<512x128xf32>
    %7 = arith.addf %3, %6 : vector<512x128xf32>
    %c0_6 = arith.constant 0 : index
    %c0_7 = arith.constant 0 : index
    %8 = vector.load %arg8[%c0_6, %c0_7] : memref<512x128xf32, #tpu.memory_space<vmem>>, vector<512x128xf32>
    tpu.vector_store %arg8[%c0_6, %c0_7], %7 {strides = array<i32>} : memref<512x128xf32, #tpu.memory_space<vmem>>, vector<512x128xf32>,
    %c0_i32_8 = arith.constant 0 : i32
    %9 = arith.cmpi eq, %arg2, %c0_i32_8 : i32
    %10 = arith.extui %9 : i1 to i32
    %c0_i32_9 = arith.constant 0 : i32
    %11 = arith.cmpi ne, %10, %c0_i32_9 : i32
    scf.if %11 {
      %c0_10 = arith.constant 0 : index
      %c0_11 = arith.constant 0 : index
      %12 = vector.load %arg8[%c0_10, %c0_11] : memref<512x128xf32, #tpu.memory_space<vmem>>, vector<512x128xf32>
      %c0_12 = arith.constant 0 : index
      %c0_13 = arith.constant 0 : index
      %13 = vector.load %arg5[%c0_12, %c0_13] : memref<1x128xf32, #tpu.memory_space<vmem>>, vector<1x128xf32>
      %14 = vector.broadcast %13 : vector<1x128xf32> to vector<512x128xf32>
      %15 = arith.mulf %12, %14 : vector<512x128xf32>
      %c0_14 = arith.constant 0 : index
      %c0_15 = arith.constant 0 : index
      %16 = vector.load %arg6[%c0_14, %c0_15] : memref<1x128xf32, #tpu.memory_space<vmem>>, vector<1x128xf32>
      %17 = vector.broadcast %16 : vector<1x128xf32> to vector<512x128xf32>
      %18 = arith.addf %15, %17 : vector<512x128xf32>
      %cst_16 = arith.constant 0.000000e+00 : f32
      %19 = vector.broadcast %cst_16 : f32 to vector<512x128xf32>
      %20 = arith.maximumf %18, %19 : vector<512x128xf32>
      %21 = arith.truncf %20 : vector<512x128xf32> to vector<512x128xbf16>
      %c0_17 = arith.constant 0 : index
      %c0_18 = arith.constant 0 : index
      %22 = vector.load %arg7[%c0_17, %c0_18] : memref<512x128xbf16, #tpu.memory_space<vmem>>, vector<512x128xbf16>
      tpu.vector_store %arg7[%c0_17, %c0_18], %21 {strides = array<i32>} : memref<512x128xbf16, #tpu.memory_space<vmem>>, vector<512x128xbf16>,
    } else {
    }
    return
  }
  func.func @transform_0(%arg0: i32, %arg1: i32, %arg2: i32) -> (i32, i32) {
    %c0_i32 = arith.constant 0 : i32
    return %arg0, %arg2 : i32, i32
  }
  func.func @transform_1(%arg0: i32, %arg1: i32, %arg2: i32) -> (i32, i32) {
    %c0_i32 = arith.constant 0 : i32
    return %arg2, %arg1 : i32, i32
  }
  func.func @transform_2(%arg0: i32, %arg1: i32, %arg2: i32) -> (i32, i32) {
    %c0_i32 = arith.constant 0 : i32
    %c0_i32_0 = arith.constant 0 : i32
    return %c0_i32, %arg1 : i32, i32
  }
  func.func @transform_3(%arg0: i32, %arg1: i32, %arg2: i32) -> (i32, i32) {
    %c0_i32 = arith.constant 0 : i32
    %c0_i32_0 = arith.constant 0 : i32
    return %c0_i32, %arg1 : i32, i32
  }
  func.func @transform_4(%arg0: i32, %arg1: i32, %arg2: i32) -> (i32, i32) {
    %c0_i32 = arith.constant 0 : i32
    return %arg0, %arg1 : i32, i32
  }
}

</mosaic_0001>

<bundles_post_ra>
// kernel: conv_bn.1
= control target key start
LH: loop header
LB: loop body
LE: loop exit
PB: predicated region body
PF: predicated region fallthrough
CT: control target
= control target key end

     0   :  { %s2774_s0 = inlined_call_operand.vmem [shape: bf16[512,256], index: 0, kind: input, shape index: {}]   ;;  %s2775_s1 = inlined_call_operand.vmem [shape: bf16[256,128], index: 1, kind: input, shape index: {}]   ;;  %s2776_s2 = inlined_call_operand.vmem [shape: f32[1,128], index: 2, kind: input, shape index: {}]   ;;  %s2777_s3 = inlined_call_operand.vmem [shape: f32[1,128], index: 3, kind: input, shape index: {}]   ;;  %s2778_s4 = inlined_call_operand.hbm [shape: bf16[512,128], index: 4, kind: output, shape index: {}]  }
   0x1   :  { %v1932_v0 = vld [vmem:[%s2775_s1 + $0x38] sm:$0xff]  ;;  %v1931_v2 = vld [vmem:[%s2775_s1 + $0x30] sm:$0xff]  ;;  %v1930_v4 = vld [vmem:[%s2775_s1 + $0x28] sm:$0xff] }
   0x2   :  { %v1940_v1 = vld [vmem:[%s2775_s1 + $0x78] sm:$0xff]  ;;  %662 = vmatpush.bf16.msra.mxu0 %v1932_v0  ;;  %2132 = vmatpush.bf16.msra.mxu2 %v1932_v0  ;;  %v1939_v3 = vld [vmem:[%s2775_s1 + $0x70] sm:$0xff]  ;;  %v1938_v5 = vld [vmem:[%s2775_s1 + $0x68] sm:$0xff] }
   0x3   :  { %831 = vmatpush.bf16.msra.mxu1 %v1940_v1  ;;  %2140 = vmatpush.bf16.msra.mxu3 %v1940_v1 }
   0x6   :  { %663 = vmatpush.bf16.msra.mxu0 %v1931_v2  ;;  %2133 = vmatpush.bf16.msra.mxu2 %v1931_v2 }
   0x7   :  { %832 = vmatpush.bf16.msra.mxu1 %v1939_v3  ;;  %2141 = vmatpush.bf16.msra.mxu3 %v1939_v3 }
   0x8   :  { %9 = vsyncpa [#allocation4], 0  ;;  %v1929_v6 = vld [vmem:[%s2775_s1 + $0x20] sm:$0xff]  ;;  %v1928_v8 = vld [vmem:[%s2775_s1 + $0x18] sm:$0xff]  ;;  %s1529_s16 = sshll.u32 %s2778_s4, 4  ;;  %s2182_s17 = smov 64   ;;  %s1530_s16 = int_to_ptr.hbm [resolvable:$true] %s1529_s16 }
   0x9   :  { %v1937_v7 = vld [vmem:[%s2775_s1 + $0x60] sm:$0xff]  ;;  %v1936_v9 = vld [vmem:[%s2775_s1 + $0x58] sm:$0xff]  ;;  %v1927_v10 = vld [vmem:[%s2775_s1 + $0x10] sm:$0xff]  ;;  %s2183_s18 = smov 4  }
   0xa   :  { %664 = vmatpush.bf16.msra.mxu0 %v1930_v4  ;;  %2134 = vmatpush.bf16.msra.mxu2 %v1930_v4  ;;  %v1935_v11 = vld [vmem:[%s2775_s1 + $0x50] sm:$0xff]  ;;  %v1926_v12 = vld [vmem:[%s2775_s1 + $0x8] sm:$0xff]  ;;  %v1925_v14 = vld [vmem:[%s2775_s1] sm:$0xff] }
   0xb   :  { %833 = vmatpush.bf16.msra.mxu1 %v1938_v5  ;;  %2142 = vmatpush.bf16.msra.mxu3 %v1938_v5  ;;  %v1934_v13 = vld [vmem:[%s2775_s1 + $0x48] sm:$0xff]  ;;  %v1933_v15 = vld [vmem:[%s2775_s1 + $0x40] sm:$0xff]  ;;  %v1551_v28 = vld [vmem:[%s2774_s0 + $0x10] sm:$0xf] }
   0xc   :  { %v1543_v16 = vld [vmem:[%s2774_s0] sm:$0xf]  ;;  %v1862_v17 = vld [vmem:[%s2774_s0 + $0x4] sm:$0xf0]  ;;  %v1861_v20 = vld [vmem:[%s2774_s0 + $0x4] sm:$0xf] }
   0xd   :  { %v1671_v18 = vld [vmem:[%s2774_s0 + $0x100] sm:$0xf]  ;;  %v1894_v19 = vld [vmem:[%s2774_s0 + $0x104] sm:$0xf0]  ;;  %v1545_v21 = vld [vmem:[%s2774_s0 + $0x8] sm:$0xf0]  ;;  %v1544_v24 = vor.u32 %v1862_v17, %v1543_v16 }
   0xe   :  { %665 = vmatpush.bf16.msra.mxu0 %v1929_v6  ;;  %2135 = vmatpush.bf16.msra.mxu2 %v1929_v6  ;;  %v1893_v22 = vld [vmem:[%s2774_s0 + $0x104] sm:$0xf]  ;;  %v1673_v23 = vld [vmem:[%s2774_s0 + $0x108] sm:$0xf0]  ;;  %v1672_v25 = vor.u32 %v1894_v19, %v1671_v18  ;;  %v1548_v26 = vor.u32 %v1861_v20, %v1545_v21  ;;  %v1864_v29 = vld [vmem:[%s2774_s0 + $0x14] sm:$0xf0] }
   0xf   :  { %834 = vmatpush.bf16.msra.mxu1 %v1937_v7  ;;  %2143 = vmatpush.bf16.msra.mxu3 %v1937_v7  ;;  %v1676_v27 = vor.u32 %v1893_v22, %v1673_v23  ;;  %v1679_v30 = vld [vmem:[%s2774_s0 + $0x110] sm:$0xf]  ;;  %v1896_v31 = vld [vmem:[%s2774_s0 + $0x114] sm:$0xf0]  ;;  %v1863_v32 = vld [vmem:[%s2774_s0 + $0x14] sm:$0xf]  ;;  %v1552_v36 = vor.u32 %v1864_v29, %v1551_v28 }
  0x10   :  { %v1553_v33 = vld [vmem:[%s2774_s0 + $0x18] sm:$0xf0]  ;;  %v1895_v34 = vld [vmem:[%s2774_s0 + $0x114] sm:$0xf]  ;;  %v1680_v37 = vor.u32 %v1896_v31, %v1679_v30  ;;  %v1559_v40 = vld [vmem:[%s2774_s0 + $0x20] sm:$0xf] }
  0x11   :  { %v1681_v35 = vld [vmem:[%s2774_s0 + $0x118] sm:$0xf0]  ;;  %v1556_v38 = vor.u32 %v1863_v32, %v1553_v33  ;;  %v1866_v41 = vld [vmem:[%s2774_s0 + $0x24] sm:$0xf0]  ;;  %v1687_v42 = vld [vmem:[%s2774_s0 + $0x120] sm:$0xf] }
  0x12   :  { %666 = vmatpush.bf16.msra.mxu0 %v1928_v8  ;;  %2136 = vmatpush.bf16.msra.mxu2 %v1928_v8  ;;  %v1684_v39 = vor.u32 %v1895_v34, %v1681_v35  ;;  %v1898_v43 = vld [vmem:[%s2774_s0 + $0x124] sm:$0xf0]  ;;  %v1865_v44 = vld [vmem:[%s2774_s0 + $0x24] sm:$0xf]  ;;  %v1561_v45 = vld [vmem:[%s2774_s0 + $0x28] sm:$0xf0]  ;;  %v1560_v48 = vor.u32 %v1866_v41, %v1559_v40 }
  0x13   :  { %835 = vmatpush.bf16.msra.mxu1 %v1936_v9  ;;  %2144 = vmatpush.bf16.msra.mxu3 %v1936_v9  ;;  %v1897_v46 = vld [vmem:[%s2774_s0 + $0x124] sm:$0xf]  ;;  %v1689_v47 = vld [vmem:[%s2774_s0 + $0x128] sm:$0xf0]  ;;  %v1688_v49 = vor.u32 %v1898_v43, %v1687_v42  ;;  %v1564_v50 = vor.u32 %v1865_v44, %v1561_v45  ;;  %v1567_v52 = vld [vmem:[%s2774_s0 + $0x30] sm:$0xf] }
  0x14   :  { %v1692_v51 = vor.u32 %v1897_v46, %v1689_v47  ;;  %v1868_v53 = vld [vmem:[%s2774_s0 + $0x34] sm:$0xf0]  ;;  %v1695_v54 = vld [vmem:[%s2774_s0 + $0x130] sm:$0xf]  ;;  %v1867_v56 = vld [vmem:[%s2774_s0 + $0x34] sm:$0xf] }
  0x15   :  { %v1900_v55 = vld [vmem:[%s2774_s0 + $0x134] sm:$0xf0]  ;;  %v1569_v57 = vld [vmem:[%s2774_s0 + $0x38] sm:$0xf0]  ;;  %v1899_v58 = vld [vmem:[%s2774_s0 + $0x134] sm:$0xf]  ;;  %v1568_v60 = vor.u32 %v1868_v53, %v1567_v52 }
  0x16   :  { %667 = vmatpush.bf16.msra.mxu0 %v1927_v10  ;;  %2137 = vmatpush.bf16.msra.mxu2 %v1927_v10  ;;  %v1697_v59 = vld [vmem:[%s2774_s0 + $0x138] sm:$0xf0]  ;;  %v1696_v61 = vor.u32 %v1900_v55, %v1695_v54  ;;  %v1572_v62 = vor.u32 %v1867_v56, %v1569_v57  ;;  %v1575_v0 = vld [vmem:[%s2774_s0 + $0x40] sm:$0xf]  ;;  %v1870_v1 = vld [vmem:[%s2774_s0 + $0x44] sm:$0xf0] }
  0x17   :  { %836 = vmatpush.bf16.msra.mxu1 %v1935_v11  ;;  %2145 = vmatpush.bf16.msra.mxu3 %v1935_v11  ;;  %v1700_v63 = vor.u32 %v1899_v58, %v1697_v59  ;;  %v1703_v2 = vld [vmem:[%s2774_s0 + $0x140] sm:$0xf]  ;;  %v1902_v3 = vld [vmem:[%s2774_s0 + $0x144] sm:$0xf0]  ;;  %v1869_v4 = vld [vmem:[%s2774_s0 + $0x44] sm:$0xf]  ;;  %v1576_v8 = vor.u32 %v1870_v1, %v1575_v0 }
  0x18   :  { %v1577_v5 = vld [vmem:[%s2774_s0 + $0x48] sm:$0xf0]  ;;  %v1901_v6 = vld [vmem:[%s2774_s0 + $0x144] sm:$0xf]  ;;  %v1704_v9 = vor.u32 %v1902_v3, %v1703_v2  ;;  %v1871_v16 = vld [vmem:[%s2774_s0 + $0x54] sm:$0xf] }
  0x19   :  { %v1705_v7 = vld [vmem:[%s2774_s0 + $0x148] sm:$0xf0]  ;;  %v1580_v10 = vor.u32 %v1869_v4, %v1577_v5  ;;  %v1585_v17 = vld [vmem:[%s2774_s0 + $0x58] sm:$0xf0]  ;;  %v1903_v18 = vld [vmem:[%s2774_s0 + $0x154] sm:$0xf] }
  0x1a   :  { %668 = vmatpush.bf16.msra.mxu0 %v1926_v12  ;;  %2138 = vmatpush.bf16.msra.mxu2 %v1926_v12  ;;  %v1708_v11 = vor.u32 %v1901_v6, %v1705_v7  ;;  %v1583_v12 = vld [vmem:[%s2774_s0 + $0x50] sm:$0xf]  ;;  %v1713_v19 = vld [vmem:[%s2774_s0 + $0x158] sm:$0xf0]  ;;  %v1588_v22 = vor.u32 %v1871_v16, %v1585_v17  ;;  %v1873_v28 = vld [vmem:[%s2774_s0 + $0x64] sm:$0xf] }
  0x1b   :  { %837 = vmatpush.bf16.msra.mxu1 %v1934_v13  ;;  %2146 = vmatpush.bf16.msra.mxu3 %v1934_v13  ;;  %v1872_v13 = vld [vmem:[%s2774_s0 + $0x54] sm:$0xf0]  ;;  %v1716_v23 = vor.u32 %v1903_v18, %v1713_v19  ;;  %v1593_v29 = vld [vmem:[%s2774_s0 + $0x68] sm:$0xf0]  ;;  %v1905_v30 = vld [vmem:[%s2774_s0 + $0x164] sm:$0xf] }
  0x1c   :  { %v1584_v20 = vor.u32 %v1872_v13, %v1583_v12  ;;  %v1721_v31 = vld [vmem:[%s2774_s0 + $0x168] sm:$0xf0]  ;;  %v1596_v34 = vor.u32 %v1873_v28, %v1593_v29  ;;  %v1875_v40 = vld [vmem:[%s2774_s0 + $0x74] sm:$0xf]  ;;  %v1601_v41 = vld [vmem:[%s2774_s0 + $0x78] sm:$0xf0] }
  0x1d   :  { %v1724_v35 = vor.u32 %v1905_v30, %v1721_v31  ;;  %v1907_v42 = vld [vmem:[%s2774_s0 + $0x174] sm:$0xf]  ;;  %v1729_v43 = vld [vmem:[%s2774_s0 + $0x178] sm:$0xf0]  ;;  %v1604_v46 = vor.u32 %v1875_v40, %v1601_v41  ;;  %v1877_v52 = vld [vmem:[%s2774_s0 + $0x84] sm:$0xf] }
  0x1e   :  { %669 = vmatpush.bf16.msra.mxu0 %v1925_v14  ;;  %2139 = vmatpush.bf16.msra.mxu2 %v1925_v14  ;;  %v1711_v14 = vld [vmem:[%s2774_s0 + $0x150] sm:$0xf]  ;;  %v1732_v47 = vor.u32 %v1907_v42, %v1729_v43  ;;  %v1609_v53 = vld [vmem:[%s2774_s0 + $0x88] sm:$0xf0]  ;;  %v1909_v54 = vld [vmem:[%s2774_s0 + $0x184] sm:$0xf] }
  0x1f   :  { %838 = vmatpush.bf16.msra.mxu1 %v1933_v15  ;;  %2147 = vmatpush.bf16.msra.mxu3 %v1933_v15  ;;  %v1904_v15 = vld [vmem:[%s2774_s0 + $0x154] sm:$0xf0]  ;;  %v1737_v55 = vld [vmem:[%s2774_s0 + $0x188] sm:$0xf0]  ;;  %v1612_v59 = vor.u32 %v1877_v52, %v1609_v53  ;;  %v2482_v3 = vld [vmem:[%s2777_s3] ss:$0 sm:$0xff] }
  0x20   :  { %v1712_v21 = vor.u32 %v1904_v15, %v1711_v14  ;;  %v1912_v13 = vld [vmem:[%s2774_s0 + $0x194] sm:$0xf0]  ;;  %v1879_v14 = vld [vmem:[%s2774_s0 + $0x94] sm:$0xf]  ;;  %v1617_v15 = vld [vmem:[%s2774_s0 + $0x98] sm:$0xf0] }
  0x21   :  { %670 = vmatmul.bf16.vlgmr.msra.gmra.mxu0 %v1544_v24  ;;  %750 = vmatmul.bf16.vlgmr.msra.gmra.mxu2 %v1672_v25  ;;  %v1591_v24 = vld [vmem:[%s2774_s0 + $0x60] sm:$0xf]  ;;  %v1874_v25 = vld [vmem:[%s2774_s0 + $0x64] sm:$0xf0]  ;;  %v1911_v16 = vld [vmem:[%s2774_s0 + $0x194] sm:$0xf] }
  0x22   :  { %839 = vmatmul.bf16.vlgmr.msra.gmra.mxu1 %v1548_v26  ;;  %919 = vmatmul.bf16.vlgmr.msra.gmra.mxu3 %v1676_v27  ;;  %v1719_v26 = vld [vmem:[%s2774_s0 + $0x160] sm:$0xf]  ;;  %v1906_v27 = vld [vmem:[%s2774_s0 + $0x164] sm:$0xf0]  ;;  %v1592_v32 = vor.u32 %v1874_v25, %v1591_v24  ;;  %v1745_v17 = vld [vmem:[%s2774_s0 + $0x198] sm:$0xf0]  ;;  %v1620_v24 = vor.u32 %v1879_v14, %v1617_v15 }
  0x23   :  { %v1720_v33 = vor.u32 %v1906_v27, %v1719_v26  ;;  %v1748_v29 = vor.u32 %v1911_v16, %v1745_v17  ;;  %v1881_v52 = vld [vmem:[%s2774_s0 + $0xa4] sm:$0xf]  ;;  %v1625_v53 = vld [vmem:[%s2774_s0 + $0xa8] sm:$0xf0] }
  0x31   :  { %675 = vmatmul.bf16.gmra.mxu0 %v1552_v36  ;;  %755 = vmatmul.bf16.gmra.mxu2 %v1680_v37  ;;  %v1599_v36 = vld [vmem:[%s2774_s0 + $0x70] sm:$0xf]  ;;  %v1876_v37 = vld [vmem:[%s2774_s0 + $0x74] sm:$0xf0] }
  0x32   :  { %844 = vmatmul.bf16.gmra.mxu1 %v1556_v38  ;;  %924 = vmatmul.bf16.gmra.mxu3 %v1684_v39  ;;  %v1727_v38 = vld [vmem:[%s2774_s0 + $0x170] sm:$0xf]  ;;  %v1908_v39 = vld [vmem:[%s2774_s0 + $0x174] sm:$0xf0]  ;;  %v1600_v44 = vor.u32 %v1876_v37, %v1599_v36 }
  0x33   :  { %v1728_v45 = vor.u32 %v1908_v39, %v1727_v38 }
  0x41   :  { %680 = vmatmul.bf16.gmra.mxu0 %v1560_v48  ;;  %760 = vmatmul.bf16.gmra.mxu2 %v1688_v49  ;;  %v1607_v48 = vld [vmem:[%s2774_s0 + $0x80] sm:$0xf]  ;;  %v1878_v49 = vld [vmem:[%s2774_s0 + $0x84] sm:$0xf0] }
  0x42   :  { %849 = vmatmul.bf16.gmra.mxu1 %v1564_v50  ;;  %929 = vmatmul.bf16.gmra.mxu3 %v1692_v51  ;;  %v1735_v50 = vld [vmem:[%s2774_s0 + $0x180] sm:$0xf]  ;;  %v1910_v51 = vld [vmem:[%s2774_s0 + $0x184] sm:$0xf0]  ;;  %v1608_v56 = vor.u32 %v1878_v49, %v1607_v48 }
  0x43   :  { %v1736_v57 = vor.u32 %v1910_v51, %v1735_v50  ;;  %v1751_v48 = vld [vmem:[%s2774_s0 + $0x1a0] sm:$0xf]  ;;  %v1914_v51 = vld [vmem:[%s2774_s0 + $0x1a4] sm:$0xf0] }
  0x51   :  { %685 = vmatmul.bf16.gmra.mxu0 %v1568_v60  ;;  %765 = vmatmul.bf16.gmra.mxu2 %v1696_v61  ;;  %v1740_v60 = vor.u32 %v1909_v54, %v1737_v55  ;;  %v1913_v54 = vld [vmem:[%s2774_s0 + $0x1a4] sm:$0xf]  ;;  %v1753_v55 = vld [vmem:[%s2774_s0 + $0x1a8] sm:$0xf0] }
  0x52   :  { %854 = vmatmul.bf16.gmra.mxu1 %v1572_v62  ;;  %934 = vmatmul.bf16.gmra.mxu3 %v1700_v63  ;;  %v2476_v63 = vld [vmem:[%s2776_s2] ss:$0 sm:$0xff] }
  0x61   :  { %690 = vmatmul.bf16.gmra.mxu0 %v1576_v8  ;;  %770 = vmatmul.bf16.gmra.mxu2 %v1704_v9  ;;  %v1615_v8 = vld [vmem:[%s2774_s0 + $0x90] sm:$0xf]  ;;  %v1880_v9 = vld [vmem:[%s2774_s0 + $0x94] sm:$0xf0] }
  0x62   :  { %859 = vmatmul.bf16.gmra.mxu1 %v1580_v10  ;;  %939 = vmatmul.bf16.gmra.mxu3 %v1708_v11  ;;  %v1743_v10 = vld [vmem:[%s2774_s0 + $0x190] sm:$0xf] }
  0x71   :  { %695 = vmatmul.bf16.gmra.mxu0 %v1584_v20  ;;  %775 = vmatmul.bf16.gmra.mxu2 %v1712_v21 }
  0x72   :  { %864 = vmatmul.bf16.gmra.mxu1 %v1588_v22  ;;  %944 = vmatmul.bf16.gmra.mxu3 %v1716_v23  ;;  %v1616_v22 = vor.u32 %v1880_v9, %v1615_v8  ;;  %v1744_v23 = vor.u32 %v1912_v13, %v1743_v10 }
  0x81   :  { %700 = vmatmul.bf16.gmra.mxu0 %v1592_v32  ;;  %780 = vmatmul.bf16.gmra.mxu2 %v1720_v33 }
  0x82   :  { %869 = vmatmul.bf16.gmra.mxu1 %v1596_v34  ;;  %949 = vmatmul.bf16.gmra.mxu3 %v1724_v35 }
  0x91   :  { %705 = vmatmul.bf16.gmra.mxu0 %v1600_v44  ;;  %785 = vmatmul.bf16.gmra.mxu2 %v1728_v45 }
  0x92   :  { %874 = vmatmul.bf16.gmra.mxu1 %v1604_v46  ;;  %954 = vmatmul.bf16.gmra.mxu3 %v1732_v47  ;;  %v1623_v46 = vld [vmem:[%s2774_s0 + $0xa0] sm:$0xf]  ;;  %v1882_v47 = vld [vmem:[%s2774_s0 + $0xa4] sm:$0xf0] }
  0x9e   :  { %v671_v58 = vpop.f32.mrf.mxu0 }
  0x9f   :  { %v840_v61 = vpop.f32.mrf.mxu1 }
  0xa0   :  { %v841_v62 = vadd.f32 %v840_v61, %v671_v58  ;;  %v1752_v61 = vor.u32 %v1914_v51, %v1751_v48 }
  0xa1   :  { %710 = vmatmul.bf16.gmra.mxu0 %v1608_v56  ;;  %790 = vmatmul.bf16.gmra.mxu2 %v1736_v57 }
  0xa2   :  { %879 = vmatmul.bf16.gmra.mxu1 %v1612_v59  ;;  %959 = vmatmul.bf16.gmra.mxu3 %v1740_v60  ;;  %v1199_v2 = vmul.f32 %v2476_v63, %v841_v62  ;;  %v1624_v60 = vor.u32 %v1882_v47, %v1623_v46  ;;  %v1628_v62 = vor.u32 %v1881_v52, %v1625_v53 }
  0xa4   :  { %v751_v0 = vpop.f32.mrf.mxu2  ;;  %v1267_v11 = vadd.f32 %v2482_v3, %v1199_v2 }
  0xa5   :  { %v920_v1 = vpop.f32.mrf.mxu3 }
  0xa6   :  { %v673_v4 = vpop.f32.mrf.mxu0  ;;  %v921_v6 = vadd.f32 %v920_v1, %v751_v0  ;;  %v1331_v25 = vmax.f32 %v1267_v11, 0.0 }
  0xa7   :  { %v842_v5 = vpop.f32.mrf.mxu1 }
  0xa8   :  { %v843_v7 = vadd.f32 %v842_v5, %v673_v4  ;;  %v1231_v18 = vmul.f32 %v2476_v63, %v921_v6  ;;  %v1756_v5 = vor.u32 %v1913_v54, %v1753_v55 }
  0xaa   :  { %v1200_v12 = vmul.f32 %v2476_v63, %v843_v7  ;;  %v1299_v31 = vadd.f32 %v2482_v3, %v1231_v18 }
  0xac   :  { %v1268_v19 = vadd.f32 %v2482_v3, %v1200_v12  ;;  %v753_v20 = vpop.f32.mrf.mxu2  ;;  %v1363_v36 = vmax.f32 %v1299_v31, 0.0  ;;  %v1761_v31 = vld [vmem:[%s2774_s0 + $0x1b8] sm:$0xf0] }
  0xad   :  { %v922_v21 = vpop.f32.mrf.mxu3 }
  0xae   :  { %v1332_v26 = vmax.f32 %v1268_v19, 0.0  ;;  %v923_v27 = vadd.f32 %v922_v21, %v753_v20  ;;  %v676_v28 = vpop.f32.mrf.mxu0 }
  0xaf   :  { %v845_v30 = vpop.f32.mrf.mxu1 }
  0xb0   :  { %v1944_v32 = vpack.c.bf16 %v1332_v26, %v1331_v25  ;;  %v1232_v33 = vmul.f32 %v2476_v63, %v923_v27  ;;  %v846_v35 = vadd.f32 %v845_v30, %v676_v28  ;;  %v1916_v27 = vld [vmem:[%s2774_s0 + $0x1b4] sm:$0xf0]  ;;  %v1883_v28 = vld [vmem:[%s2774_s0 + $0xb4] sm:$0xf] }
  0xb1   :  { %715 = vmatmul.bf16.gmra.mxu0 %v1616_v22  ;;  %795 = vmatmul.bf16.gmra.mxu2 %v1744_v23  ;;  %v1631_v22 = vld [vmem:[%s2774_s0 + $0xb0] sm:$0xf]  ;;  %v1884_v23 = vld [vmem:[%s2774_s0 + $0xb4] sm:$0xf0]  ;;  %v1915_v30 = vld [vmem:[%s2774_s0 + $0x1b4] sm:$0xf] }
  0xb2   :  { %1945 = vst [vmem:[#allocation3] sm:$0xff] %v1944_v32   ;;  %v1300_v34 = vadd.f32 %v2482_v3, %v1232_v33  ;;  %884 = vmatmul.bf16.gmra.mxu1 %v1620_v24  ;;  %964 = vmatmul.bf16.gmra.mxu3 %v1748_v29  ;;  %v1201_v41 = vmul.f32 %v2476_v63, %v846_v35  ;;  %v1759_v24 = vld [vmem:[%s2774_s0 + $0x1b0] sm:$0xf]  ;;  %v1633_v29 = vld [vmem:[%s2774_s0 + $0xb8] sm:$0xf0] }
  0xb4   :  { %v1364_v37 = vmax.f32 %v1300_v34, 0.0  ;;  %v756_v38 = vpop.f32.mrf.mxu2  ;;  %v1269_v49 = vadd.f32 %v2482_v3, %v1201_v41 }
  0xb5   :  { %v925_v39 = vpop.f32.mrf.mxu3 }
  0xb6   :  { %v2024_v40 = vpack.c.bf16 %v1364_v37, %v1363_v36  ;;  %v678_v42 = vpop.f32.mrf.mxu0  ;;  %v926_v44 = vadd.f32 %v925_v39, %v756_v38  ;;  %v1333_v0 = vmax.f32 %v1269_v49, 0.0  ;;  %v1632_v36 = vor.u32 %v1884_v23, %v1631_v22 }
  0xb7   :  { %v847_v43 = vpop.f32.mrf.mxu1  ;;  %v1760_v37 = vor.u32 %v1916_v27, %v1759_v24  ;;  %v1636_v38 = vor.u32 %v1883_v28, %v1633_v29 }
  0xb8   :  { %2116 = vst [vmem:[#allocation3 + $0x80] sm:$0xff] %v2024_v40   ;;  %v848_v45 = vadd.f32 %v847_v43, %v678_v42  ;;  %v1233_v56 = vmul.f32 %v2476_v63, %v926_v44  ;;  %v1764_v43 = vor.u32 %v1915_v30, %v1761_v31 }
  0xba   :  { %v1202_v50 = vmul.f32 %v2476_v63, %v848_v45  ;;  %v1301_v7 = vadd.f32 %v2482_v3, %v1233_v56 }
  0xbc   :  { %v1270_v57 = vadd.f32 %v2482_v3, %v1202_v50  ;;  %v758_v58 = vpop.f32.mrf.mxu2  ;;  %v1365_v12 = vmax.f32 %v1301_v7, 0.0  ;;  %v1769_v7 = vld [vmem:[%s2774_s0 + $0x1c8] sm:$0xf0] }
  0xbd   :  { %v927_v59 = vpop.f32.mrf.mxu3 }
  0xbe   :  { %v1334_v1 = vmax.f32 %v1270_v57, 0.0  ;;  %v928_v2 = vadd.f32 %v927_v59, %v758_v58  ;;  %v681_v4 = vpop.f32.mrf.mxu0 }
  0xbf   :  { %v850_v6 = vpop.f32.mrf.mxu1 }
  0xc0   :  { %v1949_v8 = vpack.c.bf16 %v1334_v1, %v1333_v0  ;;  %v1234_v9 = vmul.f32 %v2476_v63, %v928_v2  ;;  %v851_v11 = vadd.f32 %v850_v6, %v681_v4  ;;  %v1918_v2 = vld [vmem:[%s2774_s0 + $0x1c4] sm:$0xf0]  ;;  %v1885_v4 = vld [vmem:[%s2774_s0 + $0xc4] sm:$0xf] }
  0xc1   :  { %720 = vmatmul.bf16.gmra.mxu0 %v1624_v60  ;;  %800 = vmatmul.bf16.gmra.mxu2 %v1752_v61  ;;  %v1639_v60 = vld [vmem:[%s2774_s0 + $0xc0] sm:$0xf]  ;;  %v1886_v61 = vld [vmem:[%s2774_s0 + $0xc4] sm:$0xf0]  ;;  %v1917_v6 = vld [vmem:[%s2774_s0 + $0x1c4] sm:$0xf] }
  0xc2   :  { %2101 = vst [vmem:[#allocation3 + $0x8] sm:$0xff] %v1949_v8   ;;  %v1302_v10 = vadd.f32 %v2482_v3, %v1234_v9  ;;  %889 = vmatmul.bf16.gmra.mxu1 %v1628_v62  ;;  %969 = vmatmul.bf16.gmra.mxu3 %v1756_v5  ;;  %v1203_v17 = vmul.f32 %v2476_v63, %v851_v11  ;;  %v1767_v62 = vld [vmem:[%s2774_s0 + $0x1c0] sm:$0xf]  ;;  %v1641_v5 = vld [vmem:[%s2774_s0 + $0xc8] sm:$0xf0] }
  0xc4   :  { %v1366_v13 = vmax.f32 %v1302_v10, 0.0  ;;  %v761_v14 = vpop.f32.mrf.mxu2  ;;  %v1271_v25 = vadd.f32 %v2482_v3, %v1203_v17 }
  0xc5   :  { %v930_v15 = vpop.f32.mrf.mxu3 }
  0xc6   :  { %v2029_v16 = vpack.c.bf16 %v1366_v13, %v1365_v12  ;;  %v683_v18 = vpop.f32.mrf.mxu0  ;;  %v931_v20 = vadd.f32 %v930_v15, %v761_v14  ;;  %v1335_v39 = vmax.f32 %v1271_v25, 0.0  ;;  %v1640_v12 = vor.u32 %v1886_v61, %v1639_v60 }
  0xc7   :  { %v852_v19 = vpop.f32.mrf.mxu1  ;;  %v1768_v13 = vor.u32 %v1918_v2, %v1767_v62  ;;  %v1644_v14 = vor.u32 %v1885_v4, %v1641_v5 }
  0xc8   :  { %2117 = vst [vmem:[#allocation3 + $0x88] sm:$0xff] %v2029_v16   ;;  %v853_v21 = vadd.f32 %v852_v19, %v683_v18  ;;  %v1235_v32 = vmul.f32 %v2476_v63, %v931_v20  ;;  %v1772_v19 = vor.u32 %v1917_v6, %v1769_v7 }
  0xca   :  { %v1204_v26 = vmul.f32 %v2476_v63, %v853_v21  ;;  %v1303_v45 = vadd.f32 %v2482_v3, %v1235_v32 }
  0xcc   :  { %v1272_v33 = vadd.f32 %v2482_v3, %v1204_v26  ;;  %v763_v34 = vpop.f32.mrf.mxu2  ;;  %v1367_v50 = vmax.f32 %v1303_v45, 0.0  ;;  %v1777_v45 = vld [vmem:[%s2774_s0 + $0x1d8] sm:$0xf0] }
  0xcd   :  { %v932_v35 = vpop.f32.mrf.mxu3 }
  0xce   :  { %v1336_v40 = vmax.f32 %v1272_v33, 0.0  ;;  %v933_v41 = vadd.f32 %v932_v35, %v763_v34  ;;  %v686_v42 = vpop.f32.mrf.mxu0 }
  0xcf   :  { %v855_v44 = vpop.f32.mrf.mxu1 }
  0xd0   :  { %v1954_v46 = vpack.c.bf16 %v1336_v40, %v1335_v39  ;;  %v1236_v47 = vmul.f32 %v2476_v63, %v933_v41  ;;  %v856_v49 = vadd.f32 %v855_v44, %v686_v42  ;;  %v1920_v41 = vld [vmem:[%s2774_s0 + $0x1d4] sm:$0xf0]  ;;  %v1887_v42 = vld [vmem:[%s2774_s0 + $0xd4] sm:$0xf] }
  0xd1   :  { %725 = vmatmul.bf16.gmra.mxu0 %v1632_v36  ;;  %805 = vmatmul.bf16.gmra.mxu2 %v1760_v37  ;;  %v1647_v36 = vld [vmem:[%s2774_s0 + $0xd0] sm:$0xf]  ;;  %v1888_v37 = vld [vmem:[%s2774_s0 + $0xd4] sm:$0xf0]  ;;  %v1919_v44 = vld [vmem:[%s2774_s0 + $0x1d4] sm:$0xf] }
  0xd2   :  { %2102 = vst [vmem:[#allocation3 + $0x10] sm:$0xff] %v1954_v46   ;;  %v1304_v48 = vadd.f32 %v2482_v3, %v1236_v47  ;;  %894 = vmatmul.bf16.gmra.mxu1 %v1636_v38  ;;  %974 = vmatmul.bf16.gmra.mxu3 %v1764_v43  ;;  %v1205_v55 = vmul.f32 %v2476_v63, %v856_v49  ;;  %v1775_v38 = vld [vmem:[%s2774_s0 + $0x1d0] sm:$0xf]  ;;  %v1649_v43 = vld [vmem:[%s2774_s0 + $0xd8] sm:$0xf0] }
  0xd4   :  { %v1368_v51 = vmax.f32 %v1304_v48, 0.0  ;;  %v766_v52 = vpop.f32.mrf.mxu2  ;;  %v1273_v0 = vadd.f32 %v2482_v3, %v1205_v55 }
  0xd5   :  { %v935_v53 = vpop.f32.mrf.mxu3 }
  0xd6   :  { %v2034_v54 = vpack.c.bf16 %v1368_v51, %v1367_v50  ;;  %v688_v56 = vpop.f32.mrf.mxu0  ;;  %v936_v58 = vadd.f32 %v935_v53, %v766_v52  ;;  %v1337_v15 = vmax.f32 %v1273_v0, 0.0  ;;  %v1648_v50 = vor.u32 %v1888_v37, %v1647_v36 }
  0xd7   :  { %v857_v57 = vpop.f32.mrf.mxu1  ;;  %v1776_v51 = vor.u32 %v1920_v41, %v1775_v38  ;;  %v1652_v52 = vor.u32 %v1887_v42, %v1649_v43 }
  0xd8   :  { %2118 = vst [vmem:[#allocation3 + $0x90] sm:$0xff] %v2034_v54   ;;  %v858_v59 = vadd.f32 %v857_v57, %v688_v56  ;;  %v1237_v8 = vmul.f32 %v2476_v63, %v936_v58  ;;  %v1780_v57 = vor.u32 %v1919_v44, %v1777_v45 }
  0xda   :  { %v1206_v1 = vmul.f32 %v2476_v63, %v858_v59  ;;  %v1305_v21 = vadd.f32 %v2482_v3, %v1237_v8 }
  0xdc   :  { %v1274_v9 = vadd.f32 %v2482_v3, %v1206_v1  ;;  %v768_v10 = vpop.f32.mrf.mxu2  ;;  %v1369_v26 = vmax.f32 %v1305_v21, 0.0  ;;  %v1785_v21 = vld [vmem:[%s2774_s0 + $0x1e8] sm:$0xf0] }
  0xdd   :  { %v937_v11 = vpop.f32.mrf.mxu3 }
  0xde   :  { %v1338_v16 = vmax.f32 %v1274_v9, 0.0  ;;  %v938_v17 = vadd.f32 %v937_v11, %v768_v10  ;;  %v691_v18 = vpop.f32.mrf.mxu0 }
  0xdf   :  { %v860_v20 = vpop.f32.mrf.mxu1 }
  0xe0   :  { %v1959_v22 = vpack.c.bf16 %v1338_v16, %v1337_v15  ;;  %v1238_v23 = vmul.f32 %v2476_v63, %v938_v17  ;;  %v861_v25 = vadd.f32 %v860_v20, %v691_v18  ;;  %v1922_v17 = vld [vmem:[%s2774_s0 + $0x1e4] sm:$0xf0]  ;;  %v1889_v18 = vld [vmem:[%s2774_s0 + $0xe4] sm:$0xf] }
  0xe1   :  { %730 = vmatmul.bf16.gmra.mxu0 %v1640_v12  ;;  %810 = vmatmul.bf16.gmra.mxu2 %v1768_v13  ;;  %v1655_v12 = vld [vmem:[%s2774_s0 + $0xe0] sm:$0xf]  ;;  %v1890_v13 = vld [vmem:[%s2774_s0 + $0xe4] sm:$0xf0]  ;;  %v1921_v20 = vld [vmem:[%s2774_s0 + $0x1e4] sm:$0xf] }
  0xe2   :  { %2103 = vst [vmem:[#allocation3 + $0x18] sm:$0xff] %v1959_v22   ;;  %v1306_v24 = vadd.f32 %v2482_v3, %v1238_v23  ;;  %899 = vmatmul.bf16.gmra.mxu1 %v1644_v14  ;;  %979 = vmatmul.bf16.gmra.mxu3 %v1772_v19  ;;  %v1207_v31 = vmul.f32 %v2476_v63, %v861_v25  ;;  %v1783_v14 = vld [vmem:[%s2774_s0 + $0x1e0] sm:$0xf]  ;;  %v1657_v19 = vld [vmem:[%s2774_s0 + $0xe8] sm:$0xf0] }
  0xe4   :  { %v1370_v27 = vmax.f32 %v1306_v24, 0.0  ;;  %v771_v28 = vpop.f32.mrf.mxu2  ;;  %v1275_v39 = vadd.f32 %v2482_v3, %v1207_v31 }
  0xe5   :  { %v940_v29 = vpop.f32.mrf.mxu3 }
  0xe6   :  { %v2039_v30 = vpack.c.bf16 %v1370_v27, %v1369_v26  ;;  %v693_v32 = vpop.f32.mrf.mxu0  ;;  %v941_v34 = vadd.f32 %v940_v29, %v771_v28  ;;  %v1339_v53 = vmax.f32 %v1275_v39, 0.0  ;;  %v1656_v26 = vor.u32 %v1890_v13, %v1655_v12 }
  0xe7   :  { %v862_v33 = vpop.f32.mrf.mxu1  ;;  %v1784_v27 = vor.u32 %v1922_v17, %v1783_v14  ;;  %v1660_v28 = vor.u32 %v1889_v18, %v1657_v19 }
  0xe8   :  { %2119 = vst [vmem:[#allocation3 + $0x98] sm:$0xff] %v2039_v30   ;;  %v863_v35 = vadd.f32 %v862_v33, %v693_v32  ;;  %v1239_v46 = vmul.f32 %v2476_v63, %v941_v34  ;;  %v1788_v33 = vor.u32 %v1921_v20, %v1785_v21 }
  0xea   :  { %v1208_v40 = vmul.f32 %v2476_v63, %v863_v35  ;;  %v1307_v59 = vadd.f32 %v2482_v3, %v1239_v46 }
  0xec   :  { %v1276_v47 = vadd.f32 %v2482_v3, %v1208_v40  ;;  %v773_v48 = vpop.f32.mrf.mxu2  ;;  %v1371_v1 = vmax.f32 %v1307_v59, 0.0  ;;  %v1793_v59 = vld [vmem:[%s2774_s0 + $0x1f8] sm:$0xf0] }
  0xed   :  { %v942_v49 = vpop.f32.mrf.mxu3 }
  0xee   :  { %v1340_v54 = vmax.f32 %v1276_v47, 0.0  ;;  %v943_v55 = vadd.f32 %v942_v49, %v773_v48  ;;  %v696_v56 = vpop.f32.mrf.mxu0 }
  0xef   :  { %v865_v58 = vpop.f32.mrf.mxu1 }
  0xf0   :  { %v1964_v60 = vpack.c.bf16 %v1340_v54, %v1339_v53  ;;  %v1240_v61 = vmul.f32 %v2476_v63, %v943_v55  ;;  %v866_v0 = vadd.f32 %v865_v58, %v696_v56  ;;  %v1924_v55 = vld [vmem:[%s2774_s0 + $0x1f4] sm:$0xf0]  ;;  %v1891_v56 = vld [vmem:[%s2774_s0 + $0xf4] sm:$0xf] }
  0xf1   :  { %735 = vmatmul.bf16.gmra.mxu0 %v1648_v50  ;;  %815 = vmatmul.bf16.gmra.mxu2 %v1776_v51  ;;  %v1663_v50 = vld [vmem:[%s2774_s0 + $0xf0] sm:$0xf]  ;;  %v1892_v51 = vld [vmem:[%s2774_s0 + $0xf4] sm:$0xf0]  ;;  %v1923_v58 = vld [vmem:[%s2774_s0 + $0x1f4] sm:$0xf] }
  0xf2   :  { %2104 = vst [vmem:[#allocation3 + $0x20] sm:$0xff] %v1964_v60   ;;  %v1308_v62 = vadd.f32 %v2482_v3, %v1240_v61  ;;  %904 = vmatmul.bf16.gmra.mxu1 %v1652_v52  ;;  %984 = vmatmul.bf16.gmra.mxu3 %v1780_v57  ;;  %v1209_v7 = vmul.f32 %v2476_v63, %v866_v0  ;;  %v1791_v52 = vld [vmem:[%s2774_s0 + $0x1f0] sm:$0xf]  ;;  %v1665_v57 = vld [vmem:[%s2774_s0 + $0xf8] sm:$0xf0] }
  0xf4   :  { %v1372_v2 = vmax.f32 %v1308_v62, 0.0  ;;  %v776_v4 = vpop.f32.mrf.mxu2  ;;  %v1277_v15 = vadd.f32 %v2482_v3, %v1209_v7 }
  0xf5   :  { %v945_v5 = vpop.f32.mrf.mxu3 }
  0xf6   :  { %v2044_v6 = vpack.c.bf16 %v1372_v2, %v1371_v1  ;;  %v698_v8 = vpop.f32.mrf.mxu0  ;;  %v946_v10 = vadd.f32 %v945_v5, %v776_v4  ;;  %v1341_v29 = vmax.f32 %v1277_v15, 0.0  ;;  %v1664_v1 = vor.u32 %v1892_v51, %v1663_v50 }
  0xf7   :  { %v867_v9 = vpop.f32.mrf.mxu1  ;;  %v1792_v2 = vor.u32 %v1924_v55, %v1791_v52  ;;  %v1668_v4 = vor.u32 %v1891_v56, %v1665_v57 }
  0xf8   :  { %2120 = vst [vmem:[#allocation3 + $0xa0] sm:$0xff] %v2044_v6   ;;  %v868_v11 = vadd.f32 %v867_v9, %v698_v8  ;;  %v1241_v22 = vmul.f32 %v2476_v63, %v946_v10  ;;  %v1796_v9 = vor.u32 %v1923_v58, %v1793_v59 }
  0xfa   :  { %v1210_v16 = vmul.f32 %v2476_v63, %v868_v11  ;;  %v1309_v35 = vadd.f32 %v2482_v3, %v1241_v22 }
  0xfc   :  { %v1278_v23 = vadd.f32 %v2482_v3, %v1210_v16  ;;  %v778_v24 = vpop.f32.mrf.mxu2  ;;  %v1373_v40 = vmax.f32 %v1309_v35, 0.0 }
  0xfd   :  { %v947_v25 = vpop.f32.mrf.mxu3 }
  0xfe   :  { %v1342_v30 = vmax.f32 %v1278_v23, 0.0  ;;  %v948_v31 = vadd.f32 %v947_v25, %v778_v24  ;;  %v701_v32 = vpop.f32.mrf.mxu0 }
  0xff   :  { %v870_v34 = vpop.f32.mrf.mxu1 }
 0x100   :  { %v1969_v36 = vpack.c.bf16 %v1342_v30, %v1341_v29  ;;  %v1242_v37 = vmul.f32 %v2476_v63, %v948_v31  ;;  %v871_v39 = vadd.f32 %v870_v34, %v701_v32 }
 0x101   :  { %740 = vmatmul.bf16.gmra.mxu0 %v1656_v26  ;;  %820 = vmatmul.bf16.gmra.mxu2 %v1784_v27 }
 0x102   :  { %2105 = vst [vmem:[#allocation3 + $0x28] sm:$0xff] %v1969_v36   ;;  %v1310_v38 = vadd.f32 %v2482_v3, %v1242_v37  ;;  %909 = vmatmul.bf16.gmra.mxu1 %v1660_v28  ;;  %989 = vmatmul.bf16.gmra.mxu3 %v1788_v33  ;;  %v1211_v45 = vmul.f32 %v2476_v63, %v871_v39 }
 0x104   :  { %v1374_v41 = vmax.f32 %v1310_v38, 0.0  ;;  %v781_v42 = vpop.f32.mrf.mxu2  ;;  %v1279_v53 = vadd.f32 %v2482_v3, %v1211_v45 }
 0x105   :  { %v950_v43 = vpop.f32.mrf.mxu3 }
 0x106   :  { %v2049_v44 = vpack.c.bf16 %v1374_v41, %v1373_v40  ;;  %v703_v46 = vpop.f32.mrf.mxu0  ;;  %v951_v48 = vadd.f32 %v950_v43, %v781_v42  ;;  %v1343_v5 = vmax.f32 %v1279_v53, 0.0 }
 0x107   :  { %v872_v47 = vpop.f32.mrf.mxu1 }
 0x108   :  { %2121 = vst [vmem:[#allocation3 + $0xa8] sm:$0xff] %v2049_v44   ;;  %v873_v49 = vadd.f32 %v872_v47, %v703_v46  ;;  %v1243_v60 = vmul.f32 %v2476_v63, %v951_v48 }
 0x10a   :  { %v1212_v54 = vmul.f32 %v2476_v63, %v873_v49  ;;  %v1311_v11 = vadd.f32 %v2482_v3, %v1243_v60 }
 0x10c   :  { %v1280_v61 = vadd.f32 %v2482_v3, %v1212_v54  ;;  %v783_v62 = vpop.f32.mrf.mxu2  ;;  %v1375_v16 = vmax.f32 %v1311_v11, 0.0 }
 0x10d   :  { %v952_v0 = vpop.f32.mrf.mxu3 }
 0x10e   :  { %v1344_v6 = vmax.f32 %v1280_v61, 0.0  ;;  %v953_v7 = vadd.f32 %v952_v0, %v783_v62  ;;  %v706_v8 = vpop.f32.mrf.mxu0 }
 0x10f   :  { %v875_v10 = vpop.f32.mrf.mxu1 }
 0x110   :  { %v1974_v12 = vpack.c.bf16 %v1344_v6, %v1343_v5  ;;  %v1244_v13 = vmul.f32 %v2476_v63, %v953_v7  ;;  %v876_v15 = vadd.f32 %v875_v10, %v706_v8 }
 0x111   :  { %745 = vmatmul.bf16.gmra.mxu0 %v1664_v1  ;;  %825 = vmatmul.bf16.gmra.mxu2 %v1792_v2 }
 0x112   :  { %2106 = vst [vmem:[#allocation3 + $0x30] sm:$0xff] %v1974_v12   ;;  %v1312_v14 = vadd.f32 %v2482_v3, %v1244_v13  ;;  %914 = vmatmul.bf16.gmra.mxu1 %v1668_v4  ;;  %994 = vmatmul.bf16.gmra.mxu3 %v1796_v9  ;;  %v1213_v21 = vmul.f32 %v2476_v63, %v876_v15 }
 0x114   :  { %v1376_v17 = vmax.f32 %v1312_v14, 0.0  ;;  %v786_v18 = vpop.f32.mrf.mxu2  ;;  %v1281_v26 = vadd.f32 %v2482_v3, %v1213_v21 }
 0x115   :  { %v955_v19 = vpop.f32.mrf.mxu3 }
 0x116   :  { %v2054_v20 = vpack.c.bf16 %v1376_v17, %v1375_v16  ;;  %v708_v22 = vpop.f32.mrf.mxu0  ;;  %v956_v24 = vadd.f32 %v955_v19, %v786_v18  ;;  %v1345_v32 = vmax.f32 %v1281_v26, 0.0 }
 0x117   :  { %v877_v23 = vpop.f32.mrf.mxu1 }
 0x118   :  { %2122 = vst [vmem:[#allocation3 + $0xb0] sm:$0xff] %v2054_v20   ;;  %v878_v25 = vadd.f32 %v877_v23, %v708_v22  ;;  %v1245_v28 = vmul.f32 %v2476_v63, %v956_v24 }
 0x11a   :  { %v1214_v27 = vmul.f32 %v2476_v63, %v878_v25  ;;  %v1313_v37 = vadd.f32 %v2482_v3, %v1245_v28 }
 0x11c   :  { %v1282_v29 = vadd.f32 %v2482_v3, %v1214_v27  ;;  %v788_v30 = vpop.f32.mrf.mxu2  ;;  %v1377_v42 = vmax.f32 %v1313_v37, 0.0 }
 0x11d   :  { %v957_v31 = vpop.f32.mrf.mxu3 }
 0x11e   :  { %v1346_v33 = vmax.f32 %v1282_v29, 0.0  ;;  %v958_v34 = vadd.f32 %v957_v31, %v788_v30  ;;  %v711_v35 = vpop.f32.mrf.mxu0 }
 0x11f   :  { %v880_v36 = vpop.f32.mrf.mxu1 }
 0x120   :  { %v1979_v38 = vpack.c.bf16 %v1346_v33, %v1345_v32  ;;  %v1246_v39 = vmul.f32 %v2476_v63, %v958_v34  ;;  %v881_v41 = vadd.f32 %v880_v36, %v711_v35 }
 0x122   :  { %2107 = vst [vmem:[#allocation3 + $0x38] sm:$0xff] %v1979_v38   ;;  %v1314_v40 = vadd.f32 %v2482_v3, %v1246_v39  ;;  %v1215_v47 = vmul.f32 %v2476_v63, %v881_v41 }
 0x124   :  { %v1378_v43 = vmax.f32 %v1314_v40, 0.0  ;;  %v791_v44 = vpop.f32.mrf.mxu2  ;;  %v1283_v52 = vadd.f32 %v2482_v3, %v1215_v47 }
 0x125   :  { %v960_v45 = vpop.f32.mrf.mxu3 }
 0x126   :  { %v2059_v46 = vpack.c.bf16 %v1378_v43, %v1377_v42  ;;  %v713_v48 = vpop.f32.mrf.mxu0  ;;  %v961_v50 = vadd.f32 %v960_v45, %v791_v44  ;;  %v1347_v58 = vmax.f32 %v1283_v52, 0.0 }
 0x127   :  { %v882_v49 = vpop.f32.mrf.mxu1 }
 0x128   :  { %2123 = vst [vmem:[#allocation3 + $0xb8] sm:$0xff] %v2059_v46   ;;  %v883_v51 = vadd.f32 %v882_v49, %v713_v48  ;;  %v1247_v54 = vmul.f32 %v2476_v63, %v961_v50 }
 0x12a   :  { %v1216_v53 = vmul.f32 %v2476_v63, %v883_v51  ;;  %v1315_v0 = vadd.f32 %v2482_v3, %v1247_v54 }
 0x12c   :  { %v1284_v55 = vadd.f32 %v2482_v3, %v1216_v53  ;;  %v793_v56 = vpop.f32.mrf.mxu2  ;;  %v1379_v6 = vmax.f32 %v1315_v0, 0.0 }
 0x12d   :  { %v962_v57 = vpop.f32.mrf.mxu3 }
 0x12e   :  { %v1348_v59 = vmax.f32 %v1284_v55, 0.0  ;;  %v963_v60 = vadd.f32 %v962_v57, %v793_v56  ;;  %v716_v61 = vpop.f32.mrf.mxu0 }
 0x12f   :  { %v885_v62 = vpop.f32.mrf.mxu1 }
 0x130   :  { %v1984_v1 = vpack.c.bf16 %v1348_v59, %v1347_v58  ;;  %v1248_v2 = vmul.f32 %v2476_v63, %v963_v60  ;;  %v886_v5 = vadd.f32 %v885_v62, %v716_v61 }
 0x132   :  { %2108 = vst [vmem:[#allocation3 + $0x40] sm:$0xff] %v1984_v1   ;;  %v1316_v4 = vadd.f32 %v2482_v3, %v1248_v2  ;;  %v1217_v11 = vmul.f32 %v2476_v63, %v886_v5 }
 0x134   :  { %v1380_v7 = vmax.f32 %v1316_v4, 0.0  ;;  %v796_v8 = vpop.f32.mrf.mxu2  ;;  %v1285_v16 = vadd.f32 %v2482_v3, %v1217_v11 }
 0x135   :  { %v965_v9 = vpop.f32.mrf.mxu3 }
 0x136   :  { %v2064_v10 = vpack.c.bf16 %v1380_v7, %v1379_v6  ;;  %v718_v12 = vpop.f32.mrf.mxu0  ;;  %v966_v14 = vadd.f32 %v965_v9, %v796_v8  ;;  %v1349_v22 = vmax.f32 %v1285_v16, 0.0 }
 0x137   :  { %v887_v13 = vpop.f32.mrf.mxu1 }
 0x138   :  { %2124 = vst [vmem:[#allocation3 + $0xc0] sm:$0xff] %v2064_v10   ;;  %v888_v15 = vadd.f32 %v887_v13, %v718_v12  ;;  %v1249_v18 = vmul.f32 %v2476_v63, %v966_v14 }
 0x13a   :  { %v1218_v17 = vmul.f32 %v2476_v63, %v888_v15  ;;  %v1317_v27 = vadd.f32 %v2482_v3, %v1249_v18 }
 0x13c   :  { %v1286_v19 = vadd.f32 %v2482_v3, %v1218_v17  ;;  %v798_v20 = vpop.f32.mrf.mxu2  ;;  %v1381_v32 = vmax.f32 %v1317_v27, 0.0 }
 0x13d   :  { %v967_v21 = vpop.f32.mrf.mxu3 }
 0x13e   :  { %v1350_v23 = vmax.f32 %v1286_v19, 0.0  ;;  %v968_v24 = vadd.f32 %v967_v21, %v798_v20  ;;  %v721_v25 = vpop.f32.mrf.mxu0 }
 0x13f   :  { %v890_v26 = vpop.f32.mrf.mxu1 }
 0x140   :  { %v1989_v28 = vpack.c.bf16 %v1350_v23, %v1349_v22  ;;  %v1250_v29 = vmul.f32 %v2476_v63, %v968_v24  ;;  %v891_v31 = vadd.f32 %v890_v26, %v721_v25 }
 0x142   :  { %2109 = vst [vmem:[#allocation3 + $0x48] sm:$0xff] %v1989_v28   ;;  %v1318_v30 = vadd.f32 %v2482_v3, %v1250_v29  ;;  %v1219_v37 = vmul.f32 %v2476_v63, %v891_v31 }
 0x144   :  { %v1382_v33 = vmax.f32 %v1318_v30, 0.0  ;;  %v801_v34 = vpop.f32.mrf.mxu2  ;;  %v1287_v42 = vadd.f32 %v2482_v3, %v1219_v37 }
 0x145   :  { %v970_v35 = vpop.f32.mrf.mxu3 }
 0x146   :  { %v2069_v36 = vpack.c.bf16 %v1382_v33, %v1381_v32  ;;  %v723_v38 = vpop.f32.mrf.mxu0  ;;  %v971_v40 = vadd.f32 %v970_v35, %v801_v34  ;;  %v1351_v48 = vmax.f32 %v1287_v42, 0.0 }
 0x147   :  { %v892_v39 = vpop.f32.mrf.mxu1 }
 0x148   :  { %2125 = vst [vmem:[#allocation3 + $0xc8] sm:$0xff] %v2069_v36   ;;  %v893_v41 = vadd.f32 %v892_v39, %v723_v38  ;;  %v1251_v44 = vmul.f32 %v2476_v63, %v971_v40 }
 0x14a   :  { %v1220_v43 = vmul.f32 %v2476_v63, %v893_v41  ;;  %v1319_v53 = vadd.f32 %v2482_v3, %v1251_v44 }
 0x14c   :  { %v1288_v45 = vadd.f32 %v2482_v3, %v1220_v43  ;;  %v803_v46 = vpop.f32.mrf.mxu2  ;;  %v1383_v58 = vmax.f32 %v1319_v53, 0.0 }
 0x14d   :  { %v972_v47 = vpop.f32.mrf.mxu3 }
 0x14e   :  { %v1352_v49 = vmax.f32 %v1288_v45, 0.0  ;;  %v973_v50 = vadd.f32 %v972_v47, %v803_v46  ;;  %v726_v51 = vpop.f32.mrf.mxu0 }
 0x14f   :  { %v895_v52 = vpop.f32.mrf.mxu1 }
 0x150   :  { %v1994_v54 = vpack.c.bf16 %v1352_v49, %v1351_v48  ;;  %v1252_v55 = vmul.f32 %v2476_v63, %v973_v50  ;;  %v896_v57 = vadd.f32 %v895_v52, %v726_v51 }
 0x152   :  { %2110 = vst [vmem:[#allocation3 + $0x50] sm:$0xff] %v1994_v54   ;;  %v1320_v56 = vadd.f32 %v2482_v3, %v1252_v55  ;;  %v1221_v0 = vmul.f32 %v2476_v63, %v896_v57 }
 0x154   :  { %v1384_v59 = vmax.f32 %v1320_v56, 0.0  ;;  %v806_v60 = vpop.f32.mrf.mxu2  ;;  %v1289_v6 = vadd.f32 %v2482_v3, %v1221_v0 }
 0x155   :  { %v975_v61 = vpop.f32.mrf.mxu3 }
 0x156   :  { %v2074_v62 = vpack.c.bf16 %v1384_v59, %v1383_v58  ;;  %v728_v1 = vpop.f32.mrf.mxu0  ;;  %v976_v4 = vadd.f32 %v975_v61, %v806_v60  ;;  %v1353_v12 = vmax.f32 %v1289_v6, 0.0 }
 0x157   :  { %v897_v2 = vpop.f32.mrf.mxu1 }
 0x158   :  { %2126 = vst [vmem:[#allocation3 + $0xd0] sm:$0xff] %v2074_v62   ;;  %v898_v5 = vadd.f32 %v897_v2, %v728_v1  ;;  %v1253_v8 = vmul.f32 %v2476_v63, %v976_v4 }
 0x15a   :  { %v1222_v7 = vmul.f32 %v2476_v63, %v898_v5  ;;  %v1321_v17 = vadd.f32 %v2482_v3, %v1253_v8 }
 0x15c   :  { %v1290_v9 = vadd.f32 %v2482_v3, %v1222_v7  ;;  %v808_v10 = vpop.f32.mrf.mxu2  ;;  %v1385_v22 = vmax.f32 %v1321_v17, 0.0 }
 0x15d   :  { %v977_v11 = vpop.f32.mrf.mxu3 }
 0x15e   :  { %v1354_v13 = vmax.f32 %v1290_v9, 0.0  ;;  %v978_v14 = vadd.f32 %v977_v11, %v808_v10  ;;  %v731_v15 = vpop.f32.mrf.mxu0 }
 0x15f   :  { %v900_v16 = vpop.f32.mrf.mxu1 }
 0x160   :  { %v1999_v18 = vpack.c.bf16 %v1354_v13, %v1353_v12  ;;  %v1254_v19 = vmul.f32 %v2476_v63, %v978_v14  ;;  %v901_v21 = vadd.f32 %v900_v16, %v731_v15 }
 0x162   :  { %2111 = vst [vmem:[#allocation3 + $0x58] sm:$0xff] %v1999_v18   ;;  %v1322_v20 = vadd.f32 %v2482_v3, %v1254_v19  ;;  %v1223_v27 = vmul.f32 %v2476_v63, %v901_v21 }
 0x164   :  { %v1386_v23 = vmax.f32 %v1322_v20, 0.0  ;;  %v811_v24 = vpop.f32.mrf.mxu2  ;;  %v1291_v32 = vadd.f32 %v2482_v3, %v1223_v27 }
 0x165   :  { %v980_v25 = vpop.f32.mrf.mxu3 }
 0x166   :  { %v2079_v26 = vpack.c.bf16 %v1386_v23, %v1385_v22  ;;  %v733_v28 = vpop.f32.mrf.mxu0  ;;  %v981_v30 = vadd.f32 %v980_v25, %v811_v24  ;;  %v1355_v38 = vmax.f32 %v1291_v32, 0.0  ;;  %v2153_v23 = vld [vmem:[%s2776_s2] ss:$0 sm:$0xff]  ;;  %s2181_s2 = smov [#allocation3]  }
 0x167   :  { %v902_v29 = vpop.f32.mrf.mxu1 }
 0x168   :  { %2127 = vst [vmem:[#allocation3 + $0xd8] sm:$0xff] %v2079_v26   ;;  %v903_v31 = vadd.f32 %v902_v29, %v733_v28  ;;  %v1255_v34 = vmul.f32 %v2476_v63, %v981_v30  ;;  %v2154_v26 = vld [vmem:[%s2777_s3] ss:$0 sm:$0xff]  ;;  %s1527_s3 = sshll.u32 %s2181_s2, 4  ;;  %s1528_s3 = int_to_ptr.vmem [resolvable:$true] %s1527_s3 }
 0x16a   :  { %v1224_v33 = vmul.f32 %v2476_v63, %v903_v31  ;;  %v1323_v43 = vadd.f32 %v2482_v3, %v1255_v34 }
 0x16c   :  { %v1292_v35 = vadd.f32 %v2482_v3, %v1224_v33  ;;  %v813_v36 = vpop.f32.mrf.mxu2  ;;  %v1387_v48 = vmax.f32 %v1323_v43, 0.0 }
 0x16d   :  { %v982_v37 = vpop.f32.mrf.mxu3 }
 0x16e   :  { %v1356_v39 = vmax.f32 %v1292_v35, 0.0  ;;  %v983_v40 = vadd.f32 %v982_v37, %v813_v36  ;;  %v736_v41 = vpop.f32.mrf.mxu0 }
 0x16f   :  { %v905_v42 = vpop.f32.mrf.mxu1 }
 0x170   :  { %v2004_v44 = vpack.c.bf16 %v1356_v39, %v1355_v38  ;;  %v1256_v45 = vmul.f32 %v2476_v63, %v983_v40  ;;  %v906_v47 = vadd.f32 %v905_v42, %v736_v41 }
 0x172   :  { %2112 = vst [vmem:[#allocation3 + $0x60] sm:$0xff] %v2004_v44   ;;  %v1324_v46 = vadd.f32 %v2482_v3, %v1256_v45  ;;  %v1225_v53 = vmul.f32 %v2476_v63, %v906_v47 }
 0x174   :  { %v1388_v49 = vmax.f32 %v1324_v46, 0.0  ;;  %v816_v50 = vpop.f32.mrf.mxu2  ;;  %v1293_v58 = vadd.f32 %v2482_v3, %v1225_v53 }
 0x175   :  { %v985_v51 = vpop.f32.mrf.mxu3 }
 0x176   :  { %v2084_v52 = vpack.c.bf16 %v1388_v49, %v1387_v48  ;;  %v738_v54 = vpop.f32.mrf.mxu0  ;;  %v986_v56 = vadd.f32 %v985_v51, %v816_v50  ;;  %v1357_v1 = vmax.f32 %v1293_v58, 0.0 }
 0x177   :  { %v907_v55 = vpop.f32.mrf.mxu1 }
 0x178   :  { %2128 = vst [vmem:[#allocation3 + $0xe0] sm:$0xff] %v2084_v52   ;;  %v908_v57 = vadd.f32 %v907_v55, %v738_v54  ;;  %v1257_v60 = vmul.f32 %v2476_v63, %v986_v56 }
 0x17a   :  { %v1226_v59 = vmul.f32 %v2476_v63, %v908_v57  ;;  %v1325_v7 = vadd.f32 %v2482_v3, %v1257_v60 }
 0x17c   :  { %v1294_v61 = vadd.f32 %v2482_v3, %v1226_v59  ;;  %v818_v62 = vpop.f32.mrf.mxu2  ;;  %v1389_v12 = vmax.f32 %v1325_v7, 0.0 }
 0x17d   :  { %v987_v0 = vpop.f32.mrf.mxu3 }
 0x17e   :  { %v1358_v2 = vmax.f32 %v1294_v61, 0.0  ;;  %v988_v4 = vadd.f32 %v987_v0, %v818_v62  ;;  %v741_v5 = vpop.f32.mrf.mxu0 }
 0x17f   :  { %v910_v6 = vpop.f32.mrf.mxu1 }
 0x180   :  { %v2009_v8 = vpack.c.bf16 %v1358_v2, %v1357_v1  ;;  %v1258_v9 = vmul.f32 %v2476_v63, %v988_v4  ;;  %v911_v11 = vadd.f32 %v910_v6, %v741_v5 }
 0x182   :  { %2113 = vst [vmem:[#allocation3 + $0x68] sm:$0xff] %v2009_v8   ;;  %v1326_v10 = vadd.f32 %v2482_v3, %v1258_v9  ;;  %v1227_v17 = vmul.f32 %v2476_v63, %v911_v11 }
 0x184   :  { %v1390_v13 = vmax.f32 %v1326_v10, 0.0  ;;  %v821_v14 = vpop.f32.mrf.mxu2  ;;  %v1295_v22 = vadd.f32 %v2482_v3, %v1227_v17 }
 0x185   :  { %v990_v15 = vpop.f32.mrf.mxu3 }
 0x186   :  { %v2089_v16 = vpack.c.bf16 %v1390_v13, %v1389_v12  ;;  %v743_v18 = vpop.f32.mrf.mxu0  ;;  %v991_v20 = vadd.f32 %v990_v15, %v821_v14  ;;  %v1359_v29 = vmax.f32 %v1295_v22, 0.0 }
 0x187   :  { %v912_v19 = vpop.f32.mrf.mxu1 }
 0x188   :  { %2129 = vst [vmem:[#allocation3 + $0xe8] sm:$0xff] %v2089_v16   ;;  %v913_v21 = vadd.f32 %v912_v19, %v743_v18  ;;  %v1259_v25 = vmul.f32 %v2153_v23, %v991_v20 }
 0x18a   :  { %v1228_v24 = vmul.f32 %v2153_v23, %v913_v21  ;;  %v1327_v34 = vadd.f32 %v2154_v26, %v1259_v25 }
 0x18c   :  { %v1296_v27 = vadd.f32 %v2154_v26, %v1228_v24  ;;  %v823_v28 = vpop.f32.mrf.mxu2  ;;  %v1391_v38 = vmax.f32 %v1327_v34, 0.0 }
 0x18d   :  { %v992_v63 = vpop.f32.mrf.mxu3 }
 0x18e   :  { %v1360_v30 = vmax.f32 %v1296_v27, 0.0  ;;  %v993_v31 = vadd.f32 %v992_v63, %v823_v28  ;;  %v746_v32 = vpop.f32.mrf.mxu0 }
 0x18f   :  { %v915_v33 = vpop.f32.mrf.mxu1 }
 0x190   :  { %v2014_v3 = vpack.c.bf16 %v1360_v30, %v1359_v29  ;;  %v1260_v35 = vmul.f32 %v2153_v23, %v993_v31  ;;  %v916_v37 = vadd.f32 %v915_v33, %v746_v32 }
 0x192   :  { %2114 = vst [vmem:[#allocation3 + $0x70] sm:$0xff] %v2014_v3   ;;  %v1328_v36 = vadd.f32 %v2154_v26, %v1260_v35  ;;  %v1229_v43 = vmul.f32 %v2153_v23, %v916_v37 }
 0x194   :  { %v1392_v39 = vmax.f32 %v1328_v36, 0.0  ;;  %v826_v40 = vpop.f32.mrf.mxu2  ;;  %v1297_v48 = vadd.f32 %v2154_v26, %v1229_v43 }
 0x195   :  { %v995_v41 = vpop.f32.mrf.mxu3 }
 0x196   :  { %v2094_v42 = vpack.c.bf16 %v1392_v39, %v1391_v38  ;;  %v748_v44 = vpop.f32.mrf.mxu0  ;;  %v996_v46 = vadd.f32 %v995_v41, %v826_v40  ;;  %v1361_v54 = vmax.f32 %v1297_v48, 0.0 }
 0x197   :  { %v917_v45 = vpop.f32.mrf.mxu1 }
 0x198   :  { %2130 = vst [vmem:[#allocation3 + $0xf0] sm:$0xff] %v2094_v42   ;;  %v918_v47 = vadd.f32 %v917_v45, %v748_v44  ;;  %v1261_v50 = vmul.f32 %v2153_v23, %v996_v46 }
 0x19a   :  { %v1230_v49 = vmul.f32 %v2153_v23, %v918_v47  ;;  %v1329_v57 = vadd.f32 %v2154_v26, %v1261_v50 }
 0x19c   :  { %v1298_v51 = vadd.f32 %v2154_v26, %v1230_v49  ;;  %v828_v52 = vpop.f32.mrf.mxu2  ;;  %v1393_v61 = vmax.f32 %v1329_v57, 0.0 }
 0x19d   :  { %v997_v53 = vpop.f32.mrf.mxu3 }
 0x19e   :  { %v1362_v55 = vmax.f32 %v1298_v51, 0.0  ;;  %v998_v56 = vadd.f32 %v997_v53, %v828_v52 }
 0x1a0   :  { %v2019_v58 = vpack.c.bf16 %v1362_v55, %v1361_v54  ;;  %v1262_v59 = vmul.f32 %v2153_v23, %v998_v56 }
 0x1a2   :  { %2115 = vst [vmem:[#allocation3 + $0x78] sm:$0xff] %v2019_v58   ;;  %v1330_v60 = vadd.f32 %v2154_v26, %v1262_v59 }
 0x1a4   :  { %v1394_v62 = vmax.f32 %v1330_v60, 0.0 }
 0x1a6   :  { %v2099_v0 = vpack.c.bf16 %v1394_v62, %v1393_v61 }
 0x1a8   :  { %2131 = vst [vmem:[#allocation3 + $0xf8] sm:$0xff] %v2099_v0  }
 0x1a9   :  { %1535 = dma.vmem_to_hbm [thread:$0]  %s1528_s3, 4096, %s1530_s16, [#allocation4], %s2182_s17, %s2182_s17, %s2183_s18  }
 0x1aa   :  { %2179 = dma.done.wait [#allocation4], 4096  }
 0x1ab   :  { %2180 = vsyncadd [#allocation4], 4294963200 }
 0x1ac   :  { %1540 = vsyncpa [#allocation4], 1 }

</bundles_post_ra>
